<compile_context>
chip_gen: v5e
topology: v5e:2x2
jax: 0.10.0
libtpu: 0.0.40
codegen_flags: <defaults>
</compile_context>

<pallas_src>
import jax
import jax.numpy as jnp
from jax.experimental import pallas as pl
from jax.experimental.pallas import tpu as pltpu

EPS = 1e-5


def _resnet_block_kernel(
    x_ref,      # (N, L+2, Cin_p)        bf16, L-padded + channel-padded input
    w1s_ref,    # (3*Cin_p, 2*Cout_p)    bf16, [conv1 taps | shortcut(center tap)]
    w2_ref,     # (3*Cout_p, Cout_p)     bf16, conv2 taps
    bs_ref,     # (1, Cout_p)            f32, shortcut bias
    g1_ref,     # (1, Cout_p)            f32, bn1 gamma
    be1_ref,    # (1, Cout_p)            f32, bn1 beta
    g2_ref,     # (1, Cout_p)            f32, bn2 gamma
    be2_ref,    # (1, Cout_p)            f32, bn2 beta
    out_ref,    # (N, L, Cout_p)         f32
):
    N, Lp2, Cip = x_ref.shape
    L = Lp2 - 2
    Cop = out_ref.shape[-1]
    inv_nl = 1.0 / (N * L)

    x = x_ref[...]                                           # bf16 (N, L+2, Cin_p)

    # ---- conv1 (3 taps) + shortcut, fused into ONE MXU contraction ----
    a1 = jnp.concatenate(
        [x[:, 0:L, :], x[:, 1:L + 1, :], x[:, 2:L + 2, :]], axis=-1
    ).reshape(N * L, 3 * Cip)                                # (N*L, 3*Cin_p) bf16
    y = jnp.dot(a1, w1s_ref[...], preferred_element_type=jnp.float32)  # (N*L, 2*Cout_p) f32
    y1 = y[:, :Cop].reshape(N, L, Cop)
    shortcut = y[:, Cop:].reshape(N, L, Cop) + bs_ref[...].reshape(1, 1, Cop)

    # ---- bn1 (training-mode batch stats, single-pass sum/sumsq) + relu ----
    m1 = jnp.sum(y1, axis=(0, 1), keepdims=True) * inv_nl
    v1 = jnp.maximum(
        jnp.sum(y1 * y1, axis=(0, 1), keepdims=True) * inv_nl - m1 * m1, 0.0)
    h1 = (y1 - m1) * jax.lax.rsqrt(v1 + EPS)
    h1 = h1 * g1_ref[...].reshape(1, 1, Cop) + be1_ref[...].reshape(1, 1, Cop)
    h1 = jnp.maximum(h1, 0.0)

    # ---- conv2: shifted views built in-register (no padded VMEM scratch) ----
    h1b = h1.astype(jnp.bfloat16)
    z = jnp.zeros((N, 1, Cop), jnp.bfloat16)
    h_prev = jnp.concatenate([z, h1b[:, :L - 1, :]], axis=1)   # h_pad[l-1]
    h_next = jnp.concatenate([h1b[:, 1:, :], z], axis=1)       # h_pad[l+1]
    a2 = jnp.concatenate([h_prev, h1b, h_next], axis=-1).reshape(N * L, 3 * Cop)
    y2 = jnp.dot(a2, w2_ref[...],
                 preferred_element_type=jnp.float32).reshape(N, L, Cop)

    # ---- bn2 + residual + relu ----
    m2 = jnp.sum(y2, axis=(0, 1), keepdims=True) * inv_nl
    v2 = jnp.maximum(
        jnp.sum(y2 * y2, axis=(0, 1), keepdims=True) * inv_nl - m2 * m2, 0.0)
    h2 = (y2 - m2) * jax.lax.rsqrt(v2 + EPS)
    h2 = h2 * g2_ref[...].reshape(1, 1, Cop) + be2_ref[...].reshape(1, 1, Cop)

    out_ref[...] = jnp.maximum(h2 + shortcut, 0.0).astype(out_ref.dtype)


def _round_up_128(c):
    return max(128, ((c + 127) // 128) * 128)


@jax.jit
def resnet_block_forward(x_ncl, params):
    """x_ncl: (N, Cin, L) float32 (PyTorch NCL layout). Returns (N, Cout, L)."""
    N, Cin, L = x_ncl.shape
    Cout = params["w1"].shape[0]
    Cin_p = _round_up_128(Cin)
    Cout_p = _round_up_128(Cout)

    # --- weight layout conversions (tiny, done once in XLA) ---
    w1_t = jnp.transpose(params["w1"], (2, 1, 0))   # (Cout,Cin,3)  -> (3,Cin,Cout)
    w2_t = jnp.transpose(params["w2"], (2, 1, 0))   # (Cout,Cout,3) -> (3,Cout,Cout)
    ws_t = jnp.transpose(params["ws"][:, :, 0])     # (Cout,Cin,1)  -> (Cin,Cout)

    w1_p = jnp.zeros((3, Cin_p, Cout_p), jnp.float32).at[:, :Cin, :Cout].set(w1_t)
    ws_p = jnp.zeros((3, Cin_p, Cout_p), jnp.float32).at[1, :Cin, :Cout].set(ws_t)
    # conv1 and shortcut share the same LHS -> single fused weight (3*Cin_p, 2*Cout_p)
    w1s = jnp.concatenate([w1_p, ws_p], axis=-1).reshape(
        3 * Cin_p, 2 * Cout_p).astype(jnp.bfloat16)

    w2f = jnp.zeros((3, Cout_p, Cout_p), jnp.float32).at[:, :Cout, :Cout].set(
        w2_t).reshape(3 * Cout_p, Cout_p).astype(jnp.bfloat16)

    def pad_row(v):
        return jnp.zeros((1, Cout_p), jnp.float32).at[0, :Cout].set(v)

    # NOTE: conv biases b1/b2 intentionally dropped (cancelled by training-mode BN).
    bs = pad_row(params["bs"])
    g1, be1 = pad_row(params["g1"]), pad_row(params["be1"])
    g2, be2 = pad_row(params["g2"]), pad_row(params["be2"])

    # --- input: NCL -> NLC, zero-pad L by 1 each side, pad channels to 128, bf16 ---
    x_nlc = jnp.transpose(x_ncl, (0, 2, 1))                          # (N, L, Cin)
    x_pad = jnp.pad(x_nlc, ((0, 0), (1, 1), (0, Cin_p - Cin))).astype(jnp.bfloat16)

    # Explicit VMEM budget (kept under v7x's 64 MiB physical VMEM).
    act_bytes = 4 * N * L * Cout_p
    in_bytes = 2 * N * (L + 2) * Cin_p
    vmem_limit = int(min(max(20 * act_bytes + 2 * in_bytes, 32 << 20), 56 << 20))

    vmem = pl.BlockSpec(memory_space=pltpu.MemorySpace.VMEM)
    out_nlc = pl.pallas_call(
        _resnet_block_kernel,
        out_shape=jax.ShapeDtypeStruct((N, L, Cout_p), jnp.float32),
        in_specs=[vmem] * 8,
        out_specs=vmem,
        compiler_params=pltpu.CompilerParams(vmem_limit_bytes=vmem_limit),
    )(x_pad, w1s, w2f, bs, g1, be1, g2, be2)

    # slice away channel padding, back to PyTorch NCL
    return jnp.transpose(out_nlc[:, :, :Cout], (0, 2, 1))


def reference_forward(x_ncl, params):
    """Pure-JAX f32 reference matching PyTorch ResNetBlock.forward (training-mode BN)."""
    def conv1d(x, w_oik, b, pad):
        y = jax.lax.conv_general_dilated(
            x, w_oik, window_strides=(1,), padding=[(pad, pad)],
            dimension_numbers=("NCH", "OIH", "NCH"))
        return y + b.reshape(1, -1, 1)

    def bn(y, g, be):
        m = jnp.mean(y, axis=(0, 2), keepdims=True)
        v = jnp.mean((y - m) ** 2, axis=(0, 2), keepdims=True)
        return (y - m) * jax.lax.rsqrt(v + EPS) * g.reshape(1, -1, 1) + be.reshape(1, -1, 1)

    shortcut = conv1d(x_ncl, params["ws"], params["bs"], 0)
    h = jnp.maximum(bn(conv1d(x_ncl, params["w1"], params["b1"], 1),
                       params["g1"], params["be1"]), 0.0)
    h = bn(conv1d(h, params["w2"], params["b2"], 1), params["g2"], params["be2"])
    return jnp.maximum(h + shortcut, 0.0)


def init_params(key, in_channels, out_channels):
    ks = jax.random.split(key, 6)
    scale = 0.2
    return {
        # PyTorch-layout weights: Conv1d weight is (Cout, Cin, K)
        "w1": scale * jax.random.normal(ks[0], (out_channels, in_channels, 3), jnp.float32),
        "b1": scale * jax.random.normal(ks[1], (out_channels,), jnp.float32),
        "w2": scale * jax.random.normal(ks[2], (out_channels, out_channels, 3), jnp.float32),
        "b2": scale * jax.random.normal(ks[3], (out_channels,), jnp.float32),
        "ws": scale * jax.random.normal(ks[4], (out_channels, in_channels, 1), jnp.float32),
        "bs": scale * jax.random.normal(ks[5], (out_channels,), jnp.float32),
        # BatchNorm affine params (PyTorch default init: gamma=1, beta=0)
        "g1": jnp.ones((out_channels,), jnp.float32),
        "be1": jnp.zeros((out_channels,), jnp.float32),
        "g2": jnp.ones((out_channels,), jnp.float32),
        "be2": jnp.zeros((out_channels,), jnp.float32),
    }


if __name__ == "__main__":
    key = jax.random.PRNGKey(0)
    k_x, k_p = jax.random.split(key)

    N, Cin, Cout, L = 2, 4, 8, 16
    x = jax.random.normal(k_x, (N, Cin, L), jnp.float32)   # NCL, like PyTorch
    params = init_params(k_p, Cin, Cout)

    out = jax.block_until_ready(resnet_block_forward(x, params))
    ref = jax.block_until_ready(reference_forward(x, params))

    assert out.shape == (N, Cout, L)
    # Tolerance loosened vs. the pure-f32 version: MXU operands are bf16 (f32 accumulate).
    assert jnp.allclose(out, ref, atol=3e-2, rtol=3e-2), (
        f"max abs err = {jnp.max(jnp.abs(out - ref))}")

    print("KERNEL_OK")
</pallas_src>

<mosaic_0001>
module attributes {stable_mosaic.version = 11 : i64} {
  func.func @_resnet_block_kernel(%arg0: memref<2x18x128xbf16, #tpu.memory_space<vmem>>, %arg1: memref<384x256xbf16, #tpu.memory_space<vmem>>, %arg2: memref<384x128xbf16, #tpu.memory_space<vmem>>, %arg3: memref<1x128xf32, #tpu.memory_space<vmem>>, %arg4: memref<1x128xf32, #tpu.memory_space<vmem>>, %arg5: memref<1x128xf32, #tpu.memory_space<vmem>>, %arg6: memref<1x128xf32, #tpu.memory_space<vmem>>, %arg7: memref<1x128xf32, #tpu.memory_space<vmem>>, %arg8: memref<2x16x128xf32, #tpu.memory_space<vmem>>) attributes {dimension_semantics = [], scalar_prefetch = 0 : i64, scratch_operands = 0 : i64, tpu.core_type = #tpu.core_type<tc>} {
    %c0 = arith.constant 0 : index
    %c0_0 = arith.constant 0 : index
    %c0_1 = arith.constant 0 : index
    %0 = vector.load %arg0[%c0, %c0_0, %c0_1] : memref<2x18x128xbf16, #tpu.memory_space<vmem>>, vector<2x18x128xbf16>
    %1 = vector.extract_strided_slice %0 {offsets = [0, 0, 0], sizes = [2, 16, 128], strides = [1, 1, 1]} : vector<2x18x128xbf16> to vector<2x16x128xbf16>
    %2 = vector.extract_strided_slice %0 {offsets = [0, 1, 0], sizes = [2, 16, 128], strides = [1, 1, 1]} : vector<2x18x128xbf16> to vector<2x16x128xbf16>
    %3 = vector.extract_strided_slice %0 {offsets = [0, 2, 0], sizes = [2, 16, 128], strides = [1, 1, 1]} : vector<2x18x128xbf16> to vector<2x16x128xbf16>
    %4 = tpu.concatenate %1, %2, %3 in 2 : vector<2x16x128xbf16>, vector<2x16x128xbf16>, vector<2x16x128xbf16> -> vector<2x16x384xbf16>
    %5 = vector.shape_cast %4 : vector<2x16x384xbf16> to vector<32x384xbf16>
    %c0_2 = arith.constant 0 : index
    %c0_3 = arith.constant 0 : index
    %6 = vector.load %arg1[%c0_2, %c0_3] : memref<384x256xbf16, #tpu.memory_space<vmem>>, vector<384x256xbf16>
    %cst = arith.constant dense<0.000000e+00> : vector<32x256xf32>
    %7 = tpu.matmul %5, %6, %cst {dimension_numbers = #tpu.dot_dimension_numbers<[1], [0], [0], [1], [0, 0, 1, 1], [], []>} : vector<32x384xbf16>, vector<384x256xbf16>, vector<32x256xf32> -> vector<32x256xf32>
    %8 = vector.extract_strided_slice %7 {offsets = [0, 0], sizes = [32, 128], strides = [1, 1]} : vector<32x256xf32> to vector<32x128xf32>
    %9 = vector.shape_cast %8 : vector<32x128xf32> to vector<2x16x128xf32>
    %10 = vector.extract_strided_slice %7 {offsets = [0, 128], sizes = [32, 128], strides = [1, 1]} : vector<32x256xf32> to vector<32x128xf32>
    %11 = vector.shape_cast %10 : vector<32x128xf32> to vector<2x16x128xf32>
    %c0_4 = arith.constant 0 : index
    %c0_5 = arith.constant 0 : index
    %12 = vector.load %arg3[%c0_4, %c0_5] : memref<1x128xf32, #tpu.memory_space<vmem>>, vector<1x128xf32>
    %13 = vector.shape_cast %12 : vector<1x128xf32> to vector<1x1x128xf32>
    %14 = vector.broadcast %13 : vector<1x1x128xf32> to vector<2x16x128xf32>
    %15 = arith.addf %11, %14 : vector<2x16x128xf32>
    %cst_6 = arith.constant dense<0.000000e+00> : vector<128xf32>
    %16 = vector.multi_reduction <add>, %9, %cst_6 [0, 1] : vector<2x16x128xf32> to vector<128xf32>
    %17 = vector.shape_cast %16 : vector<128xf32> to vector<1x1x128xf32>
    %cst_7 = arith.constant 3.125000e-02 : f32
    %18 = vector.broadcast %cst_7 : f32 to vector<1x1x128xf32>
    %19 = arith.mulf %17, %18 : vector<1x1x128xf32>
    %20 = arith.mulf %9, %9 : vector<2x16x128xf32>
    %cst_8 = arith.constant dense<0.000000e+00> : vector<128xf32>
    %21 = vector.multi_reduction <add>, %20, %cst_8 [0, 1] : vector<2x16x128xf32> to vector<128xf32>
    %22 = vector.shape_cast %21 : vector<128xf32> to vector<1x1x128xf32>
    %cst_9 = arith.constant 3.125000e-02 : f32
    %23 = vector.broadcast %cst_9 : f32 to vector<1x1x128xf32>
    %24 = arith.mulf %22, %23 : vector<1x1x128xf32>
    %25 = arith.mulf %19, %19 : vector<1x1x128xf32>
    %26 = arith.subf %24, %25 : vector<1x1x128xf32>
    %cst_10 = arith.constant 0.000000e+00 : f32
    %27 = vector.broadcast %cst_10 : f32 to vector<1x1x128xf32>
    %28 = arith.maximumf %26, %27 : vector<1x1x128xf32>
    %29 = vector.broadcast %19 : vector<1x1x128xf32> to vector<2x16x128xf32>
    %30 = arith.subf %9, %29 : vector<2x16x128xf32>
    %cst_11 = arith.constant 9.99999974E-6 : f32
    %31 = vector.broadcast %cst_11 : f32 to vector<1x1x128xf32>
    %32 = arith.addf %28, %31 : vector<1x1x128xf32>
    %33 = math.rsqrt %32 : vector<1x1x128xf32>
    %34 = vector.broadcast %33 : vector<1x1x128xf32> to vector<2x16x128xf32>
    %35 = arith.mulf %30, %34 : vector<2x16x128xf32>
    %c0_12 = arith.constant 0 : index
    %c0_13 = arith.constant 0 : index
    %36 = vector.load %arg4[%c0_12, %c0_13] : memref<1x128xf32, #tpu.memory_space<vmem>>, vector<1x128xf32>
    %37 = vector.shape_cast %36 : vector<1x128xf32> to vector<1x1x128xf32>
    %38 = vector.broadcast %37 : vector<1x1x128xf32> to vector<2x16x128xf32>
    %39 = arith.mulf %35, %38 : vector<2x16x128xf32>
    %c0_14 = arith.constant 0 : index
    %c0_15 = arith.constant 0 : index
    %40 = vector.load %arg5[%c0_14, %c0_15] : memref<1x128xf32, #tpu.memory_space<vmem>>, vector<1x128xf32>
    %41 = vector.shape_cast %40 : vector<1x128xf32> to vector<1x1x128xf32>
    %42 = vector.broadcast %41 : vector<1x1x128xf32> to vector<2x16x128xf32>
    %43 = arith.addf %39, %42 : vector<2x16x128xf32>
    %cst_16 = arith.constant 0.000000e+00 : f32
    %44 = vector.broadcast %cst_16 : f32 to vector<2x16x128xf32>
    %45 = arith.maximumf %43, %44 : vector<2x16x128xf32>
    %46 = arith.truncf %45 : vector<2x16x128xf32> to vector<2x16x128xbf16>
    %cst_17 = arith.constant 0.000000e+00 : bf16
    %47 = vector.broadcast %cst_17 : bf16 to vector<2x1x128xbf16>
    %48 = vector.extract_strided_slice %46 {offsets = [0, 0, 0], sizes = [2, 15, 128], strides = [1, 1, 1]} : vector<2x16x128xbf16> to vector<2x15x128xbf16>
    %49 = tpu.concatenate %47, %48 in 1 : vector<2x1x128xbf16>, vector<2x15x128xbf16> -> vector<2x16x128xbf16>
    %50 = vector.extract_strided_slice %46 {offsets = [0, 1, 0], sizes = [2, 15, 128], strides = [1, 1, 1]} : vector<2x16x128xbf16> to vector<2x15x128xbf16>
    %51 = tpu.concatenate %50, %47 in 1 : vector<2x15x128xbf16>, vector<2x1x128xbf16> -> vector<2x16x128xbf16>
    %52 = tpu.concatenate %49, %46, %51 in 2 : vector<2x16x128xbf16>, vector<2x16x128xbf16>, vector<2x16x128xbf16> -> vector<2x16x384xbf16>
    %53 = vector.shape_cast %52 : vector<2x16x384xbf16> to vector<32x384xbf16>
    %c0_18 = arith.constant 0 : index
    %c0_19 = arith.constant 0 : index
    %54 = vector.load %arg2[%c0_18, %c0_19] : memref<384x128xbf16, #tpu.memory_space<vmem>>, vector<384x128xbf16>
    %cst_20 = arith.constant dense<0.000000e+00> : vector<32x128xf32>
    %55 = tpu.matmul %53, %54, %cst_20 {dimension_numbers = #tpu.dot_dimension_numbers<[1], [0], [0], [1], [0, 0, 1, 1], [], []>} : vector<32x384xbf16>, vector<384x128xbf16>, vector<32x128xf32> -> vector<32x128xf32>
    %56 = vector.shape_cast %55 : vector<32x128xf32> to vector<2x16x128xf32>
    %cst_21 = arith.constant dense<0.000000e+00> : vector<128xf32>
    %57 = vector.multi_reduction <add>, %56, %cst_21 [0, 1] : vector<2x16x128xf32> to vector<128xf32>
    %58 = vector.shape_cast %57 : vector<128xf32> to vector<1x1x128xf32>
    %cst_22 = arith.constant 3.125000e-02 : f32
    %59 = vector.broadcast %cst_22 : f32 to vector<1x1x128xf32>
    %60 = arith.mulf %58, %59 : vector<1x1x128xf32>
    %61 = arith.mulf %56, %56 : vector<2x16x128xf32>
    %cst_23 = arith.constant dense<0.000000e+00> : vector<128xf32>
    %62 = vector.multi_reduction <add>, %61, %cst_23 [0, 1] : vector<2x16x128xf32> to vector<128xf32>
    %63 = vector.shape_cast %62 : vector<128xf32> to vector<1x1x128xf32>
    %cst_24 = arith.constant 3.125000e-02 : f32
    %64 = vector.broadcast %cst_24 : f32 to vector<1x1x128xf32>
    %65 = arith.mulf %63, %64 : vector<1x1x128xf32>
    %66 = arith.mulf %60, %60 : vector<1x1x128xf32>
    %67 = arith.subf %65, %66 : vector<1x1x128xf32>
    %cst_25 = arith.constant 0.000000e+00 : f32
    %68 = vector.broadcast %cst_25 : f32 to vector<1x1x128xf32>
    %69 = arith.maximumf %67, %68 : vector<1x1x128xf32>
    %70 = vector.broadcast %60 : vector<1x1x128xf32> to vector<2x16x128xf32>
    %71 = arith.subf %56, %70 : vector<2x16x128xf32>
    %cst_26 = arith.constant 9.99999974E-6 : f32
    %72 = vector.broadcast %cst_26 : f32 to vector<1x1x128xf32>
    %73 = arith.addf %69, %72 : vector<1x1x128xf32>
    %74 = math.rsqrt %73 : vector<1x1x128xf32>
    %75 = vector.broadcast %74 : vector<1x1x128xf32> to vector<2x16x128xf32>
    %76 = arith.mulf %71, %75 : vector<2x16x128xf32>
    %c0_27 = arith.constant 0 : index
    %c0_28 = arith.constant 0 : index
    %77 = vector.load %arg6[%c0_27, %c0_28] : memref<1x128xf32, #tpu.memory_space<vmem>>, vector<1x128xf32>
    %78 = vector.shape_cast %77 : vector<1x128xf32> to vector<1x1x128xf32>
    %79 = vector.broadcast %78 : vector<1x1x128xf32> to vector<2x16x128xf32>
    %80 = arith.mulf %76, %79 : vector<2x16x128xf32>
    %c0_29 = arith.constant 0 : index
    %c0_30 = arith.constant 0 : index
    %81 = vector.load %arg7[%c0_29, %c0_30] : memref<1x128xf32, #tpu.memory_space<vmem>>, vector<1x128xf32>
    %82 = vector.shape_cast %81 : vector<1x128xf32> to vector<1x1x128xf32>
    %83 = vector.broadcast %82 : vector<1x1x128xf32> to vector<2x16x128xf32>
    %84 = arith.addf %80, %83 : vector<2x16x128xf32>
    %85 = arith.addf %84, %15 : vector<2x16x128xf32>
    %cst_31 = arith.constant 0.000000e+00 : f32
    %86 = vector.broadcast %cst_31 : f32 to vector<2x16x128xf32>
    %87 = arith.maximumf %85, %86 : vector<2x16x128xf32>
    %c0_32 = arith.constant 0 : index
    %c0_33 = arith.constant 0 : index
    %c0_34 = arith.constant 0 : index
    %88 = vector.load %arg8[%c0_32, %c0_33, %c0_34] : memref<2x16x128xf32, #tpu.memory_space<vmem>>, vector<2x16x128xf32>
    tpu.vector_store %arg8[%c0_32, %c0_33, %c0_34], %87 {strides = array<i32>} : memref<2x16x128xf32, #tpu.memory_space<vmem>>, vector<2x16x128xf32>,
    return
  }
}

</mosaic_0001>

<bundles_post_ra>
// kernel: resnet_block_forward.1
= control target key start
LH: loop header
LB: loop body
LE: loop exit
PB: predicated region body
PF: predicated region fallthrough
CT: control target
= control target key end

     0   :  { %vm54_vm0 = vsmask.f32 7424  ;;  %vm81_vm1 = vcmask 1046528   ;;  %vm596_vm5 = vcmask 1040384   ;;  %vm597_vm6 = vsmask.f32 256  ;;  %s1859_s1 = inlined_call_operand.vmem [shape: bf16[384,256], index: 1, kind: input, shape index: {}]   ;;  %s1860_s0 = inlined_call_operand.vmem [shape: bf16[2,18,128], index: 0, kind: input, shape index: {}]   ;;  %s1861_s4 = inlined_call_operand.vmem [shape: f32[1,128], index: 4, kind: input, shape index: {}]   ;;  %s1862_s5 = inlined_call_operand.vmem [shape: f32[1,128], index: 5, kind: input, shape index: {}]   ;;  %s1863_s2 = inlined_call_operand.vmem [shape: bf16[384,128], index: 2, kind: input, shape index: {}]   ;;  %s1864_s3 = inlined_call_operand.vmem [shape: f32[1,128], index: 3, kind: input, shape index: {}]   ;;  %s1865_s6 = inlined_call_operand.vmem [shape: f32[1,128], index: 6, kind: input, shape index: {}]   ;;  %s1866_s7 = inlined_call_operand.vmem [shape: f32[1,128], index: 7, kind: input, shape index: {}]   ;;  %s1867_s8 = inlined_call_operand.vmem [shape: f32[2,16,128], index: 8, kind: output, shape index: {}]  }
   0x1   :  { %v1006_v0 = vld [vmem:[%s1859_s1 + $0x70] sm:$0xf]  ;;  %v1253_v1 = vld [vmem:[%s1859_s1 + $0x74] sm:$0xf0]  ;;  %v998_v9 = vld [vmem:[%s1859_s1 + $0x60] sm:$0xf] }
   0x2   :  { %v1070_v2 = vld [vmem:[%s1859_s1 + $0xf0] sm:$0xf]  ;;  %v1007_v3 = vor.u32 %v1253_v1, %v1006_v0  ;;  %v1269_v4 = vld [vmem:[%s1859_s1 + $0xf4] sm:$0xf0]  ;;  %v1251_v10 = vld [vmem:[%s1859_s1 + $0x64] sm:$0xf0] }
   0x3   :  { %v1134_v5 = vld [vmem:[%s1859_s1 + $0x170] sm:$0xf]  ;;  %v1285_v6 = vld [vmem:[%s1859_s1 + $0x174] sm:$0xf0]  ;;  %v1071_v7 = vor.u32 %v1269_v4, %v1070_v2  ;;  %v1062_v11 = vld [vmem:[%s1859_s1 + $0xe0] sm:$0xf]  ;;  %v999_v12 = vor.u32 %v1251_v10, %v998_v9 }
   0x4   :  { %v1135_v8 = vor.u32 %v1285_v6, %v1134_v5  ;;  %378 = vmatpush.bf16.msra.mxu0 %v1007_v3  ;;  %v1267_v13 = vld [vmem:[%s1859_s1 + $0xe4] sm:$0xf0]  ;;  %v1126_v14 = vld [vmem:[%s1859_s1 + $0x160] sm:$0xf]  ;;  %v990_v18 = vld [vmem:[%s1859_s1 + $0x50] sm:$0xf] }
   0x5   :  { %v1283_v15 = vld [vmem:[%s1859_s1 + $0x164] sm:$0xf0]  ;;  %397 = vmatpush.bf16.msra.mxu1 %v1071_v7  ;;  %v1063_v16 = vor.u32 %v1267_v13, %v1062_v11  ;;  %v1249_v19 = vld [vmem:[%s1859_s1 + $0x54] sm:$0xf0]  ;;  %v1054_v20 = vld [vmem:[%s1859_s1 + $0xd0] sm:$0xf] }
   0x6   :  { %416 = vmatpush.bf16.msra.mxu2 %v1135_v8  ;;  %v1127_v17 = vor.u32 %v1283_v15, %v1126_v14  ;;  %v1265_v21 = vld [vmem:[%s1859_s1 + $0xd4] sm:$0xf0]  ;;  %v1118_v22 = vld [vmem:[%s1859_s1 + $0x150] sm:$0xf]  ;;  %v991_v24 = vor.u32 %v1249_v19, %v990_v18  ;;  %v982_v27 = vld [vmem:[%s1859_s1 + $0x40] sm:$0xf] }
   0x7   :  { %v1281_v23 = vld [vmem:[%s1859_s1 + $0x154] sm:$0xf0]  ;;  %v1055_v25 = vor.u32 %v1265_v21, %v1054_v20  ;;  %v1247_v28 = vld [vmem:[%s1859_s1 + $0x44] sm:$0xf0]  ;;  %v1046_v29 = vld [vmem:[%s1859_s1 + $0xc0] sm:$0xf] }
   0x8   :  { %379 = vmatpush.bf16.msra.mxu0 %v999_v12  ;;  %v1119_v26 = vor.u32 %v1281_v23, %v1118_v22  ;;  %v1263_v30 = vld [vmem:[%s1859_s1 + $0xc4] sm:$0xf0]  ;;  %v1110_v31 = vld [vmem:[%s1859_s1 + $0x140] sm:$0xf]  ;;  %v983_v33 = vor.u32 %v1247_v28, %v982_v27  ;;  %v974_v36 = vld [vmem:[%s1859_s1 + $0x30] sm:$0xf] }
   0x9   :  { %398 = vmatpush.bf16.msra.mxu1 %v1063_v16  ;;  %v1279_v32 = vld [vmem:[%s1859_s1 + $0x144] sm:$0xf0]  ;;  %v1047_v34 = vor.u32 %v1263_v30, %v1046_v29  ;;  %v1245_v37 = vld [vmem:[%s1859_s1 + $0x34] sm:$0xf0]  ;;  %v1038_v38 = vld [vmem:[%s1859_s1 + $0xb0] sm:$0xf] }
   0xa   :  { %417 = vmatpush.bf16.msra.mxu2 %v1127_v17  ;;  %v1111_v35 = vor.u32 %v1279_v32, %v1110_v31  ;;  %v1261_v39 = vld [vmem:[%s1859_s1 + $0xb4] sm:$0xf0]  ;;  %v1102_v40 = vld [vmem:[%s1859_s1 + $0x130] sm:$0xf]  ;;  %v975_v42 = vor.u32 %v1245_v37, %v974_v36  ;;  %v966_v43 = vld [vmem:[%s1859_s1 + $0x20] sm:$0xf] }
   0xb   :  { %v1277_v41 = vld [vmem:[%s1859_s1 + $0x134] sm:$0xf0]  ;;  %v1243_v44 = vld [vmem:[%s1859_s1 + $0x24] sm:$0xf0]  ;;  %v1039_v45 = vor.u32 %v1261_v39, %v1038_v38  ;;  %v1030_v47 = vld [vmem:[%s1859_s1 + $0xa0] sm:$0xf] }
   0xc   :  { %380 = vmatpush.bf16.msra.mxu0 %v991_v24  ;;  %v1103_v46 = vor.u32 %v1277_v41, %v1102_v40  ;;  %v1474_v48 = vld [vmem:[%s1860_s0] sm:$0xff]  ;;  %v32_v49 = vld [vmem:[%s1860_s0 + $0x8] sm:$0x1]  ;;  %v967_v54 = vor.u32 %v1243_v44, %v966_v43  ;;  %v958_v55 = vld [vmem:[%s1859_s1 + $0x10] sm:$0xf]  ;;  %vm607_vm7 = vcmask 1047552  }
   0xd   :  { %399 = vmatpush.bf16.msra.mxu1 %v1055_v25  ;;  %v1259_v50 = vld [vmem:[%s1859_s1 + $0xa4] sm:$0xf0]  ;;  %v1094_v51 = vld [vmem:[%s1859_s1 + $0x120] sm:$0xf]  ;;  %v50_v53 = vunpack.c.l.b16 %v32_v49  ;;  %v1241_v56 = vld [vmem:[%s1859_s1 + $0x14] sm:$0xf0] }
   0xe   :  { %418 = vmatpush.bf16.msra.mxu2 %v1119_v26  ;;  %v1275_v52 = vld [vmem:[%s1859_s1 + $0x124] sm:$0xf0]  ;;  %v1031_v57 = vor.u32 %v1259_v50, %v1030_v47  ;;  %v1022_v59 = vld [vmem:[%s1859_s1 + $0x90] sm:$0xf]  ;;  %v1257_v60 = vld [vmem:[%s1859_s1 + $0x94] sm:$0xf0]  ;;  %v959_v3 = vor.u32 %v1241_v56, %v958_v55 }
   0xf   :  { %v1095_v58 = vor.u32 %v1275_v52, %v1094_v51  ;;  %v52_v61 = vpack.c.b16 %v50_v53, %v50_v53  ;;  %v58_v62 = vshll.u32 %v1474_v48, 16  ;;  %v1086_v63 = vld [vmem:[%s1859_s1 + $0x110] sm:$0xf]  ;;  %v1273_v0 = vld [vmem:[%s1859_s1 + $0x114] sm:$0xf0]  ;;  %v1023_v4 = vor.u32 %v1257_v60, %v1022_v59  ;;  %vm1817_vm8 = vmand %vm596_vm5, %vm597_vm6 }
  0x10   :  { %381 = vmatpush.bf16.msra.mxu0 %v983_v33  ;;  %v950_v1 = vld [vmem:[%s1859_s1] sm:$0xf]  ;;  %v1239_v2 = vld [vmem:[%s1859_s1 + $0x4] sm:$0xf0]  ;;  %v1087_v8 = vor.u32 %v1273_v0, %v1086_v63  ;;  %v56_v10 = vshrl.u32 %v1474_v48, 16  ;;  %v82_v18 = vrot.slane %v1474_v48, 1  ;;  %vm608_vm9 = vmand %vm607_vm7, %vm54_vm0 }
  0x11   :  { %400 = vmatpush.bf16.msra.mxu1 %v1047_v34  ;;  %v1014_v5 = vld [vmem:[%s1859_s1 + $0x80] sm:$0xf]  ;;  %v1255_v6 = vld [vmem:[%s1859_s1 + $0x84] sm:$0xf0]  ;;  %v60_v11 = vrot.slane %v58_v62, 1  ;;  %v63_v12 = vshll.u32 %v52_v61, 16  ;;  %v951_v13 = vor.u32 %v1239_v2, %v950_v1 }
  0x12   :  { %419 = vmatpush.bf16.msra.mxu2 %v1111_v35  ;;  %v1078_v7 = vld [vmem:[%s1859_s1 + $0x100] sm:$0xf]  ;;  %v1271_v9 = vld [vmem:[%s1859_s1 + $0x104] sm:$0xf0]  ;;  %v1015_v14 = vor.u32 %v1255_v6, %v1014_v5  ;;  %v83_v19 = vrot.slane %v52_v61, 1  ;;  %v1539_v23 = vld [vmem:[%s1860_s0 + $0xc] sm:$0xff] }
  0x13   :  { %v1079_v15 = vor.u32 %v1271_v9, %v1078_v7  ;;  %v61_v16 = vor.u32 %v60_v11, %v56_v10  ;;  %v65_v17 = vrot.slane %v63_v12, 1  ;;  %v35_v20 = vld [vmem:[%s1860_s0 + $0x14] sm:$0x1]  ;;  %v70_v26 = vshll.u32 %v1539_v23, 16  ;;  %v1008_v37 = vld [vmem:[%s1859_s1 + $0x78] sm:$0xf0] }
  0x14   :  { %382 = vmatpush.bf16.msra.mxu0 %v975_v42  ;;  %v1534_v22 = vsel %vm81_vm1, %v82_v18, %v83_v19  ;;  %v51_v24 = vunpack.c.l.b16 %v35_v20  ;;  %v68_v27 = vshrl.u32 %v1539_v23, 16  ;;  %v85_v32 = vrot.slane %v1539_v23, 1  ;;  %v1252_v36 = vld [vmem:[%s1859_s1 + $0x74] sm:$0xf]  ;;  %v1250_v39 = vld [vmem:[%s1859_s1 + $0x64] sm:$0xf] }
  0x15   :  { %401 = vmatpush.bf16.msra.mxu1 %v1039_v45  ;;  %v1531_v21 = vsel %vm54_vm0, %v61_v16, %v65_v17  ;;  %v72_v28 = vrot.slane %v70_v26, 1  ;;  %v1011_v38 = vor.u32 %v1252_v36, %v1008_v37  ;;  %v1000_v40 = vld [vmem:[%s1859_s1 + $0x68] sm:$0xf0]  ;;  %v1268_v42 = vld [vmem:[%s1859_s1 + $0xf4] sm:$0xf] }
  0x16   :  { %420 = vmatpush.bf16.msra.mxu2 %v1103_v46  ;;  %v53_v25 = vpack.c.b16 %v51_v24, %v51_v24  ;;  %v1003_v41 = vor.u32 %v1250_v39, %v1000_v40  ;;  %v1072_v43 = vld [vmem:[%s1859_s1 + $0xf8] sm:$0xf0]  ;;  %v1248_v45 = vld [vmem:[%s1859_s1 + $0x54] sm:$0xf]  ;;  %v1064_v55 = vld [vmem:[%s1859_s1 + $0xe8] sm:$0xf0] }
  0x17   :  { %v73_v30 = vor.u32 %v72_v28, %v68_v27  ;;  %435 = vmatpush.bf16.msra.mxu3 %v1011_v38  ;;  %v1075_v44 = vor.u32 %v1268_v42, %v1072_v43  ;;  %v992_v46 = vld [vmem:[%s1859_s1 + $0x58] sm:$0xf0]  ;;  %v1284_v47 = vld [vmem:[%s1859_s1 + $0x174] sm:$0xf]  ;;  %v1282_v59 = vld [vmem:[%s1859_s1 + $0x164] sm:$0xf] }
  0x18   :  { %383 = vmatpush.bf16.msra.mxu0 %v967_v54  ;;  %v75_v29 = vshll.u32 %v53_v25, 16  ;;  %v86_v33 = vrot.slane %v53_v25, 1  ;;  %v995_v50 = vor.u32 %v1248_v45, %v992_v46  ;;  %v1136_v51 = vld [vmem:[%s1859_s1 + $0x178] sm:$0xf0]  ;;  %v1266_v54 = vld [vmem:[%s1859_s1 + $0xe4] sm:$0xf] }
  0x19   :  { %402 = vmatpush.bf16.msra.mxu1 %v1031_v57  ;;  %v1139_v53 = vor.u32 %v1284_v47, %v1136_v51  ;;  %v1067_v56 = vor.u32 %v1266_v54, %v1064_v55  ;;  %v1246_v57 = vld [vmem:[%s1859_s1 + $0x44] sm:$0xf]  ;;  %v1128_v61 = vld [vmem:[%s1859_s1 + $0x168] sm:$0xf0]  ;;  %v1264_v63 = vld [vmem:[%s1859_s1 + $0xd4] sm:$0xf] }
  0x1a   :  { %421 = vmatpush.bf16.msra.mxu2 %v1095_v58  ;;  %v77_v31 = vrot.slane %v75_v29, 1  ;;  %v1551_v35 = vsel %vm81_vm1, %v85_v32, %v86_v33  ;;  %v984_v58 = vld [vmem:[%s1859_s1 + $0x48] sm:$0xf0]  ;;  %v1131_v62 = vor.u32 %v1282_v59, %v1128_v61  ;;  %v1056_v0 = vld [vmem:[%s1859_s1 + $0xd8] sm:$0xf0] }
  0x1b   :  { %436 = vmatpush.bf16.msra.mxu3 %v1003_v41  ;;  %v987_v60 = vor.u32 %v1246_v57, %v984_v58  ;;  %v1059_v1 = vor.u32 %v1264_v63, %v1056_v0  ;;  %v1280_v5 = vld [vmem:[%s1859_s1 + $0x154] sm:$0xf]  ;;  %v1262_v11 = vld [vmem:[%s1859_s1 + $0xc4] sm:$0xf]  ;;  %v1048_v12 = vld [vmem:[%s1859_s1 + $0xc8] sm:$0xf0] }
  0x1c   :  { %384 = vmatpush.bf16.msra.mxu0 %v959_v3  ;;  %v1548_v34 = vsel %vm54_vm0, %v73_v30, %v77_v31  ;;  %v1244_v3 = vld [vmem:[%s1859_s1 + $0x34] sm:$0xf]  ;;  %v1278_v16 = vld [vmem:[%s1859_s1 + $0x144] sm:$0xf]  ;;  %v1112_v18 = vld [vmem:[%s1859_s1 + $0x148] sm:$0xf0] }
  0x1d   :  { %403 = vmatpush.bf16.msra.mxu1 %v1023_v4  ;;  %v976_v4 = vld [vmem:[%s1859_s1 + $0x38] sm:$0xf0]  ;;  %v1115_v19 = vor.u32 %v1278_v16, %v1112_v18  ;;  %v1260_v20 = vld [vmem:[%s1859_s1 + $0xb4] sm:$0xf]  ;;  %v1258_v37 = vld [vmem:[%s1859_s1 + $0xa4] sm:$0xf] }
  0x1e   :  { %422 = vmatpush.bf16.msra.mxu2 %v1087_v8  ;;  %v979_v7 = vor.u32 %v1244_v3, %v976_v4  ;;  %v1120_v8 = vld [vmem:[%s1859_s1 + $0x158] sm:$0xf0]  ;;  %v1240_v27 = vld [vmem:[%s1859_s1 + $0x14] sm:$0xf]  ;;  %v1032_v38 = vld [vmem:[%s1859_s1 + $0xa8] sm:$0xf0] }
  0x1f   :  { %437 = vmatpush.bf16.msra.mxu3 %v995_v50  ;;  %v1123_v10 = vor.u32 %v1280_v5, %v1120_v8  ;;  %v1040_v24 = vld [vmem:[%s1859_s1 + $0xb8] sm:$0xf0]  ;;  %v1276_v29 = vld [vmem:[%s1859_s1 + $0x134] sm:$0xf]  ;;  %v1035_v39 = vor.u32 %v1258_v37, %v1032_v38  ;;  %v1238_v40 = vld [vmem:[%s1859_s1 + $0x4] sm:$0xf] }
  0x20   :  { %385 = vmatpush.bf16.msra.mxu0 %v951_v13  ;;  %v1051_v13 = vor.u32 %v1262_v11, %v1048_v12  ;;  %v1043_v25 = vor.u32 %v1260_v20, %v1040_v24  ;;  %v960_v28 = vld [vmem:[%s1859_s1 + $0x18] sm:$0xf0]  ;;  %v952_v41 = vld [vmem:[%s1859_s1 + $0x8] sm:$0xf0]  ;;  %v1274_v42 = vld [vmem:[%s1859_s1 + $0x124] sm:$0xf] }
  0x21   :  { %404 = vmatpush.bf16.msra.mxu1 %v1015_v14  ;;  %v1242_v14 = vld [vmem:[%s1859_s1 + $0x24] sm:$0xf]  ;;  %v963_v30 = vor.u32 %v1240_v27, %v960_v28  ;;  %v1104_v31 = vld [vmem:[%s1859_s1 + $0x138] sm:$0xf0]  ;;  %v955_v43 = vor.u32 %v1238_v40, %v952_v41  ;;  %v1256_v46 = vld [vmem:[%s1859_s1 + $0x94] sm:$0xf] }
  0x22   :  { %423 = vmatpush.bf16.msra.mxu2 %v1079_v15  ;;  %v968_v15 = vld [vmem:[%s1859_s1 + $0x28] sm:$0xf0]  ;;  %v1107_v36 = vor.u32 %v1276_v29, %v1104_v31  ;;  %v1024_v47 = vld [vmem:[%s1859_s1 + $0x98] sm:$0xf0]  ;;  %v1300_v5 = vld [vmem:[%s1863_s2 + $0x70] sm:$0xff] }
  0x23   :  { %386 = vmatmul.bf16.vlgmr.msra.gmra.mxu0 %v1474_v48  ;;  %438 = vmatpush.bf16.msra.mxu3 %v987_v60  ;;  %v971_v17 = vor.u32 %v1242_v14, %v968_v15  ;;  %v1027_v54 = vor.u32 %v1256_v46, %v1024_v47  ;;  %v1088_v57 = vld [vmem:[%s1859_s1 + $0x118] sm:$0xf0]  ;;  %v1016_v60 = vld [vmem:[%s1859_s1 + $0x88] sm:$0xf0]  ;;  %v1292_v24 = vld [vmem:[%s1863_s2 + $0x30] sm:$0xff] }
  0x24   :  { %405 = vmatmul.bf16.vlgmr.msra.gmra.mxu1 %v1531_v21  ;;  %454 = vmatpush.bf16.msrb.mxu0 %v1075_v44  ;;  %v1096_v44 = vld [vmem:[%s1859_s1 + $0x128] sm:$0xf0]  ;;  %v1293_v14 = vld [vmem:[%s1863_s2 + $0x38] sm:$0xff]  ;;  %v1296_v40 = vld [vmem:[%s1863_s2 + $0x50] sm:$0xff] }
  0x25   :  { %424 = vmatmul.bf16.vlgmr.msra.gmra.mxu2 %v1534_v22  ;;  %473 = vmatpush.bf16.msrb.mxu1 %v1139_v53  ;;  %v1099_v45 = vor.u32 %v1274_v42, %v1096_v44  ;;  %v1080_v3 = vld [vmem:[%s1859_s1 + $0x108] sm:$0xf0]  ;;  %v1309_v15 = vld [vmem:[%s1863_s2 + $0xb8] sm:$0xff] }
  0x26   :  { %v1299_v16 = vld [vmem:[%s1863_s2 + $0x68] sm:$0xff]  ;;  %805 = vmatpush.bf16.msrb.mxu2 %v1293_v14  ;;  %v1305_v46 = vld [vmem:[%s1863_s2 + $0x98] sm:$0xff] }
  0x27   :  { %439 = vmatpush.bf16.msra.mxu3 %v979_v7  ;;  %v1307_v31 = vld [vmem:[%s1863_s2 + $0xa8] sm:$0xff] }
  0x28   :  { %455 = vmatpush.bf16.msrb.mxu0 %v1067_v56  ;;  %v1272_v56 = vld [vmem:[%s1859_s1 + $0x114] sm:$0xf]  ;;  %v1295_v47 = vld [vmem:[%s1863_s2 + $0x48] sm:$0xff] }
  0x29   :  { %474 = vmatpush.bf16.msrb.mxu1 %v1131_v62  ;;  %v1091_v59 = vor.u32 %v1272_v56, %v1088_v57 }
  0x2a   :  { %806 = vmatpush.bf16.msrb.mxu2 %v1292_v24 }
  0x2b   :  { %440 = vmatpush.bf16.msra.mxu3 %v971_v17 }
  0x2c   :  { %456 = vmatpush.bf16.msrb.mxu0 %v1059_v1  ;;  %v1270_v1 = vld [vmem:[%s1859_s1 + $0x104] sm:$0xf] }
  0x2d   :  { %475 = vmatpush.bf16.msrb.mxu1 %v1123_v10 }
  0x2f   :  { %441 = vmatpush.bf16.msra.mxu3 %v963_v30  ;;  %v1291_v30 = vld [vmem:[%s1863_s2 + $0x28] sm:$0xff] }
  0x30   :  { %457 = vmatpush.bf16.msrb.mxu0 %v1051_v13  ;;  %807 = vmatpush.bf16.msrb.mxu2 %v1291_v30 }
  0x31   :  { %476 = vmatpush.bf16.msrb.mxu1 %v1115_v19 }
  0x33   :  { %391 = vmatmul.bf16.gmra.mxu0 %v1539_v23  ;;  %442 = vmatpush.bf16.msra.mxu3 %v955_v43 }
  0x34   :  { %410 = vmatmul.bf16.gmra.mxu1 %v1548_v34  ;;  %458 = vmatpush.bf16.msrb.mxu0 %v1043_v25  ;;  %v1308_v25 = vld [vmem:[%s1863_s2 + $0xb0] sm:$0xff] }
  0x35   :  { %429 = vmatmul.bf16.gmra.mxu2 %v1551_v35  ;;  %477 = vmatpush.bf16.msrb.mxu1 %v1107_v36 }
  0x36   :  { %443 = vmatmul.bf16.vlgmr.msra.gmra.mxu3 %v1474_v48 }
  0x38   :  { %459 = vmatpush.bf16.msrb.mxu0 %v1035_v39  ;;  %v1290_v39 = vld [vmem:[%s1863_s2 + $0x20] sm:$0xff] }
  0x39   :  { %478 = vmatpush.bf16.msrb.mxu1 %v1099_v45  ;;  %808 = vmatpush.bf16.msrb.mxu2 %v1290_v39  ;;  %v1289_v45 = vld [vmem:[%s1863_s2 + $0x18] sm:$0xff] }
  0x3c   :  { %460 = vmatpush.bf16.msrb.mxu0 %v1027_v54  ;;  %v1304_v54 = vld [vmem:[%s1863_s2 + $0x90] sm:$0xff] }
  0x3d   :  { %479 = vmatpush.bf16.msrb.mxu1 %v1091_v59  ;;  %809 = vmatpush.bf16.msrb.mxu2 %v1289_v45  ;;  %v1303_v59 = vld [vmem:[%s1863_s2 + $0x88] sm:$0xff] }
  0x46   :  { %448 = vmatmul.bf16.gmra.mxu3 %v1539_v23  ;;  %v1306_v23 = vld [vmem:[%s1863_s2 + $0xa0] sm:$0xff] }
  0xa0   :  { %v1583_v49 = vpop.f32.mrf.mxu0 }
  0xa1   :  { %v1588_v52 = vpop.f32.mrf.mxu1 }
  0xa2   :  { %v407_v50 = vadd.f32 %v1588_v52, %v1583_v49  ;;  %v1301_v49 = vld [vmem:[%s1863_s2 + $0x78] sm:$0xff]  ;;  %v1254_v52 = vld [vmem:[%s1859_s1 + $0x84] sm:$0xf] }
  0xa3   :  { %v1019_v63 = vor.u32 %v1254_v52, %v1016_v60  ;;  %824 = vmatpush.bf16.msrb.mxu3 %v1301_v49  ;;  %v1286_v49 = vld [vmem:[%s1863_s2] sm:$0xff] }
  0xa4   :  { %v1302_v52 = vld [vmem:[%s1863_s2 + $0x80] sm:$0xff] }
  0xa5   :  { %461 = vmatpush.bf16.msrb.mxu0 %v1019_v63 }
  0xa7   :  { %825 = vmatpush.bf16.msrb.mxu3 %v1300_v5  ;;  %v1318_v5 = vld [vmem:[%s1861_s4] ss:$0 sm:$0xff] }
  0xa8   :  { %v1614_v2 = vpop.f32.mrf.mxu2  ;;  %v389_v6 = vpop.f32.mrf.mxu0  ;;  %462 = vmatmul.bf16.vlgmr.msrb.gmra.mxu0 %v1531_v21 }
  0xa9   :  { %v408_v9 = vpop.f32.mrf.mxu1  ;;  %v1709_v61 = vadd.f32 %v1614_v2, %v407_v50  ;;  %v1083_v2 = vor.u32 %v1270_v1, %v1080_v3  ;;  %843 = vmatpush.bf16.msra.mxu0 %v1309_v15 }
  0xaa   :  { %v409_v51 = vadd.f32 %v408_v9, %v389_v6 }
  0xab   :  { %v510_v6 = vmul.f32 %v1709_v61, %v1709_v61  ;;  %480 = vmatpush.bf16.msrb.mxu1 %v1083_v2  ;;  %826 = vmatpush.bf16.msrb.mxu3 %v1299_v16 }
  0xad   :  { %844 = vmatpush.bf16.msra.mxu0 %v1308_v25 }
  0xae   :  { %481 = vmatmul.bf16.vlgmr.msrb.gmra.mxu1 %v1534_v22 }
  0xaf   :  { %1310 = vmatpush.bf16.msra.mxu1 %v1309_v15 }
  0xb0   :  { %v427_v26 = vpop.f32.mrf.mxu2  ;;  %v392_v32 = vpop.f32.mrf.mxu0 }
  0xb1   :  { %v411_v33 = vpop.f32.mrf.mxu1  ;;  %v1696_v58 = vadd.f32 %v427_v26, %v409_v51  ;;  %v1298_v26 = vld [vmem:[%s1863_s2 + $0x60] sm:$0xff]  ;;  %845 = vmatpush.bf16.msra.mxu0 %v1307_v31 }
  0xb2   :  { %v412_v53 = vadd.f32 %v411_v33, %v392_v32  ;;  %827 = vmatpush.bf16.msrb.mxu3 %v1298_v26  ;;  %v1297_v32 = vld [vmem:[%s1863_s2 + $0x58] sm:$0xff] }
  0xb3   :  { %v511_v4 = vmul.f32 %v1696_v58, %v1696_v58  ;;  %v500_v7 = vadd.f32 %v1696_v58, %v1709_v61  ;;  %1311 = vmatpush.bf16.msra.mxu1 %v1308_v25 }
  0xb5   :  { %v514_v11 = vadd.f32 %v511_v4, %v510_v6  ;;  %846 = vmatpush.bf16.msra.mxu0 %v1306_v23 }
  0xb6   :  { %828 = vmatpush.bf16.msrb.mxu3 %v1297_v32 }
  0xb7   :  { %1312 = vmatpush.bf16.msra.mxu1 %v1307_v31 }
  0xb8   :  { %v430_v55 = vpop.f32.mrf.mxu2  ;;  %v394_v0 = vpop.f32.mrf.mxu0  ;;  %467 = vmatmul.bf16.gmra.mxu0 %v1548_v34 }
  0xb9   :  { %v1711_v62 = vadd.f32 %v430_v55, %v412_v53  ;;  %v413_v48 = vpop.f32.mrf.mxu1  ;;  %847 = vmatpush.bf16.msra.mxu0 %v1305_v46  ;;  %v1288_v53 = vld [vmem:[%s1863_s2 + $0x10] sm:$0xff]  ;;  %v1294_v55 = vld [vmem:[%s1863_s2 + $0x40] sm:$0xff] }
  0xba   :  { %v414_v9 = vadd.f32 %v413_v48, %v394_v0  ;;  %829 = vmatpush.bf16.msrb.mxu3 %v1296_v40  ;;  %810 = vmatpush.bf16.msrb.mxu2 %v1288_v53 }
  0xbb   :  { %v512_v8 = vmul.f32 %v1711_v62, %v1711_v62  ;;  %v501_v12 = vadd.f32 %v500_v7, %v1711_v62  ;;  %1313 = vmatpush.bf16.msra.mxu1 %v1306_v23 }
  0xbd   :  { %v515_v17 = vadd.f32 %v514_v11, %v512_v8  ;;  %848 = vmatpush.bf16.msra.mxu0 %v1304_v54  ;;  %v1319_v11 = vld [vmem:[%s1862_s5] ss:$0 sm:$0xff] }
  0xbe   :  { %486 = vmatmul.bf16.gmra.mxu1 %v1551_v35  ;;  %830 = vmatpush.bf16.msrb.mxu3 %v1295_v47  ;;  %v1287_v35 = vld [vmem:[%s1863_s2 + $0x8] sm:$0xff] }
  0xbf   :  { %1314 = vmatpush.bf16.msra.mxu1 %v1305_v46  ;;  %811 = vmatpush.bf16.msrb.mxu2 %v1287_v35 }
  0xc0   :  { %v432_v10 = vpop.f32.mrf.mxu2 }
  0xc1   :  { %v1732_v13 = vadd.f32 %v432_v10, %v414_v9  ;;  %849 = vmatpush.bf16.msra.mxu0 %v1303_v59 }
  0xc2   :  { %831 = vmatpush.bf16.msrb.mxu3 %v1294_v55 }
  0xc3   :  { %v502_v21 = vadd.f32 %v501_v12, %v1732_v13  ;;  %v513_v18 = vmul.f32 %v1732_v13, %v1732_v13  ;;  %1315 = vmatpush.bf16.msra.mxu1 %v1304_v54  ;;  %812 = vmatpush.bf16.msrb.mxu2 %v1286_v49  ;;  %v444_v54 = vpop.f32.mrf.mxu3 }
  0xc5   :  { %v503_v19 = vrot.slane %v502_v21, 4  ;;  %v516_v20 = vadd.f32 %v515_v17, %v513_v18  ;;  %850 = vmatpush.bf16.msra.mxu0 %v1302_v52 }
  0xc7   :  { %v504_v27 = vadd.f32 %v503_v19, %v502_v21  ;;  %v517_v22 = vrot.slane %v516_v20, 4  ;;  %1316 = vmatpush.bf16.msra.mxu1 %v1303_v59 }
  0xc9   :  { %v505_v28 = vrot.slane %v504_v27, 2  ;;  %v518_v29 = vadd.f32 %v517_v22, %v516_v20 }
  0xcb   :  { %v506_v33 = vadd.f32 %v505_v28, %v504_v27  ;;  %v519_v36 = vrot.slane %v518_v29, 2  ;;  %1317 = vmatpush.bf16.msra.mxu1 %v1302_v52  ;;  %v446_v59 = vpop.f32.mrf.mxu3 }
  0xcd   :  { %v507_v37 = vrot.slane %v506_v33, 1  ;;  %v520_v38 = vadd.f32 %v519_v36, %v518_v29 }
  0xcf   :  { %v508_v41 = vadd.f32 %v507_v37, %v506_v33  ;;  %v521_v42 = vrot.slane %v520_v38, 1 }
  0xd1   :  { %v509_v43 = vmul.f32 0.03125, %v508_v41  ;;  %v522_v44 = vadd.f32 %v521_v42, %v520_v38 }
  0xd3   :  { %v523_v50 = vmul.f32 0.03125, %v522_v44  ;;  %v524_v51 = vmul.f32 %v509_v43, %v509_v43  ;;  %v529_v4 = vsub.f32 %v1711_v62, %v509_v43  ;;  %v530_v2 = vsub.f32 %v1732_v13, %v509_v43 }
  0xd4   :  { %v527_v6 = vsub.f32 %v1709_v61, %v509_v43  ;;  %v528_v7 = vsub.f32 %v1696_v58, %v509_v43 }
  0xd5   :  { %v525_v34 = vsub.f32 %v523_v50, %v524_v51 }
  0xd7   :  { %v526_v56 = vmax.f32 %v525_v34, 0.0 }
  0xd9   :  { %v531_v57 = vadd.f32 1e-05, %v526_v56 }
  0xdb   :  { %1323 = vrsqrt.f32 %v531_v57  ;;  %vm538_vm3 = vweird.f32 %v531_v57 }
  0xe1   :  { %v1324_v60 = vpop.eup %1323 }
  0xe2   :  { %v533_v63 = vmul.f32 %v1324_v60, %v531_v57  ;;  %vm539_vm2 = vweird.f32 %v1324_v60 }
  0xe3   :  { %vm540_vm4 = vmor %vm538_vm3, %vm539_vm2 }
  0xe4   :  { %v534_v0 = vmul.f32 %v1324_v60, %v533_v63 }
  0xe6   :  { %v535_v48 = vmul.f32 0.5, %v534_v0  ;;  %v449_v0 = vpop.f32.mrf.mxu3 }
  0xe8   :  { %v536_v1 = vsub.f32 1.5, %v535_v48 }
  0xea   :  { %v537_v3 = vmul.f32 %v1324_v60, %v536_v1 }
  0xec   :  { %v541_v8 = vsel %vm540_vm4, %v1324_v60, %v537_v3 }
  0xed   :  { %v544_v9 = vmul.f32 %v541_v8, %v529_v4  ;;  %v545_v10 = vmul.f32 %v541_v8, %v530_v2  ;;  %v542_v12 = vmul.f32 %v541_v8, %v527_v6  ;;  %v543_v62 = vmul.f32 %v541_v8, %v528_v7 }
  0xee   :  { %v451_v2 = vpop.f32.mrf.mxu3 }
  0xef   :  { %v552_v14 = vmul.f32 %v1318_v5, %v544_v9  ;;  %v553_v13 = vmul.f32 %v1318_v5, %v545_v10  ;;  %v550_v15 = vmul.f32 %v1318_v5, %v542_v12  ;;  %v551_v16 = vmul.f32 %v1318_v5, %v543_v62 }
  0xf1   :  { %v561_v17 = vadd.f32 %v1319_v11, %v553_v13  ;;  %v558_v21 = vadd.f32 %v1319_v11, %v550_v15  ;;  %v559_v18 = vadd.f32 %v1319_v11, %v551_v16  ;;  %v560_v19 = vadd.f32 %v1319_v11, %v552_v14 }
  0xf3   :  { %v565_v61 = vmax.f32 %v561_v17, 0.0  ;;  %v562_v20 = vmax.f32 %v558_v21, 0.0  ;;  %v563_v58 = vmax.f32 %v559_v18, 0.0  ;;  %v564_v24 = vmax.f32 %v560_v19, 0.0 }
  0xf5   :  { %v569_v25 = vpack.c.bf16 %v565_v61, %v565_v61  ;;  %v566_v26 = vpack.c.bf16 %v562_v20, %v562_v20  ;;  %v567_v27 = vpack.c.bf16 %v563_v58, %v563_v58  ;;  %v568_v22 = vpack.c.bf16 %v564_v24, %v564_v24 }
  0xf7   :  { %v577_v28 = vunpack.c.l.b16 %v569_v25  ;;  %v574_v29 = vunpack.c.l.b16 %v566_v26  ;;  %v575_v30 = vunpack.c.l.b16 %v567_v27  ;;  %v576_v31 = vunpack.c.l.b16 %v568_v22 }
  0xf9   :  { %v578_v32 = vpack.c.b16 %v575_v30, %v574_v29  ;;  %v579_v33 = vpack.c.b16 %v577_v28, %v576_v31 }
  0xfb   :  { %832 = vmatmul.bf16.vlgmr.msrb.gmra.mxu3 %v578_v32  ;;  %v581_v36 = vshrl.u32 %v578_v32, 16  ;;  %v584_v37 = vshll.u32 %v578_v32, 16  ;;  %v591_v38 = vshll.u32 %v579_v33, 16  ;;  %v588_v41 = vshrl.u32 %v579_v33, 16 }
  0xfd   :  { %v583_v39 = vrot.slane %v581_v36, 7  ;;  %v601_v40 = vrot.slane %v584_v37, 1  ;;  %v603_v42 = vrot.slane %v591_v38, 1  ;;  %v590_v51 = vrot.slane %v588_v41, 7 }
  0xff   :  { %v586_v43 = vor.u32 %v584_v37, %v583_v39  ;;  %v602_v44 = vor.u32 %v601_v40, %v581_v36  ;;  %v604_v45 = vor.u32 %v603_v42, %v588_v41  ;;  %v593_v34 = vor.u32 %v591_v38, %v590_v51 }
 0x101   :  { %v599_v46 = vsel %vm1817_vm8, 0, %v586_v43  ;;  %v609_v47 = vsel %vm608_vm9, %v602_v44, 0  ;;  %v610_v50 = vsel %vm608_vm9, %v604_v45, 0  ;;  %v600_v53 = vsel %vm1817_vm8, 0, %v593_v34 }
 0x102   :  { %813 = vmatmul.bf16.vlgmr.msrb.gmra.mxu2 %v599_v46  ;;  %851 = vmatmul.bf16.vlgmr.msra.gmra.mxu0 %v609_v47 }
 0x103   :  { %856 = vmatmul.bf16.vlgmr.msra.gmra.mxu1 %v610_v50 }
 0x10b   :  { %837 = vmatmul.bf16.gmra.mxu3 %v579_v33 }
 0x112   :  { %818 = vmatmul.bf16.gmra.mxu2 %v600_v53 }
 0x125   :  { %v463_v55 = vpop.f32.mrf.mxu0 }
 0x126   :  { %v464_v56 = vadd.f32 %v463_v55, %v444_v54 }
 0x12b   :  { %v482_v35 = vpop.f32.mrf.mxu1 }
 0x12c   :  { %v1826_v57 = vadd.f32 %v482_v35, %v464_v56 }
 0x12d   :  { %v465_v49 = vpop.f32.mrf.mxu0 }
 0x12e   :  { %v466_v52 = vadd.f32 %v465_v49, %v446_v59 }
 0x133   :  { %v484_v60 = vpop.f32.mrf.mxu1 }
 0x134   :  { %v1828_v63 = vadd.f32 %v484_v60, %v466_v52 }
 0x135   :  { %v468_v48 = vpop.f32.mrf.mxu0 }
 0x136   :  { %v469_v1 = vadd.f32 %v468_v48, %v449_v0 }
 0x13b   :  { %v487_v3 = vpop.f32.mrf.mxu1 }
 0x13c   :  { %v1830_v4 = vadd.f32 %v487_v3, %v469_v1 }
 0x13d   :  { %v470_v5 = vpop.f32.mrf.mxu0 }
 0x13e   :  { %v471_v6 = vadd.f32 %v470_v5, %v451_v2 }
 0x143   :  { %v489_v7 = vpop.f32.mrf.mxu1 }
 0x144   :  { %v1832_v8 = vadd.f32 %v489_v7, %v471_v6  ;;  %v1321_v6 = vld [vmem:[%s1865_s6] ss:$0 sm:$0xff] }
 0x145   :  { %v1320_v7 = vld [vmem:[%s1864_s3] ss:$0 sm:$0xff] }
 0x17e   :  { %v833_v9 = vpop.f32.mrf.mxu3 }
 0x17f   :  { %v852_v12 = vpop.f32.mrf.mxu0 }
 0x180   :  { %v857_v15 = vpop.f32.mrf.mxu1 }
 0x185   :  { %v814_v10 = vpop.f32.mrf.mxu2 }
 0x186   :  { %v835_v11 = vpop.f32.mrf.mxu3  ;;  %v834_v17 = vadd.f32 %v833_v9, %v814_v10 }
 0x187   :  { %v854_v18 = vpop.f32.mrf.mxu0 }
 0x188   :  { %v853_v61 = vadd.f32 %v852_v12, %v834_v17  ;;  %v859_v29 = vpop.f32.mrf.mxu1 }
 0x18a   :  { %v872_v26 = vmul.f32 %v853_v61, %v853_v61 }
 0x18d   :  { %v816_v62 = vpop.f32.mrf.mxu2 }
 0x18e   :  { %v838_v14 = vpop.f32.mrf.mxu3  ;;  %v836_v13 = vadd.f32 %v835_v11, %v816_v62 }
 0x190   :  { %v855_v19 = vadd.f32 %v854_v18, %v836_v13  ;;  %v497_v18 = vadd.f32 %v1320_v7, %v1828_v63 }
 0x192   :  { %v873_v58 = vmul.f32 %v855_v19, %v855_v19  ;;  %v862_v27 = vadd.f32 %v855_v19, %v853_v61 }
 0x194   :  { %v876_v30 = vadd.f32 %v873_v58, %v872_v26 }
 0x195   :  { %v819_v16 = vpop.f32.mrf.mxu2 }
 0x196   :  { %v839_v21 = vadd.f32 %v838_v14, %v819_v16  ;;  %v840_v24 = vpop.f32.mrf.mxu3  ;;  %v1322_v14 = vld [vmem:[%s1866_s7] ss:$0 sm:$0xff] }
 0x198   :  { %v858_v20 = vadd.f32 %v857_v15, %v839_v21  ;;  %v496_v21 = vadd.f32 %v1320_v7, %v1826_v57 }
 0x19a   :  { %v874_v22 = vmul.f32 %v858_v20, %v858_v20  ;;  %v863_v31 = vadd.f32 %v862_v27, %v858_v20 }
 0x19c   :  { %v877_v33 = vadd.f32 %v876_v30, %v874_v22 }
 0x19d   :  { %v821_v25 = vpop.f32.mrf.mxu2 }
 0x19e   :  { %v841_v28 = vadd.f32 %v840_v24, %v821_v25 }
 0x1a0   :  { %v860_v32 = vadd.f32 %v859_v29, %v841_v28 }
 0x1a2   :  { %v864_v36 = vadd.f32 %v863_v31, %v860_v32  ;;  %v875_v37 = vmul.f32 %v860_v32, %v860_v32 }
 0x1a4   :  { %v865_v38 = vrot.slane %v864_v36, 4  ;;  %v878_v39 = vadd.f32 %v877_v33, %v875_v37 }
 0x1a6   :  { %v866_v23 = vadd.f32 %v865_v38, %v864_v36  ;;  %v879_v40 = vrot.slane %v878_v39, 4 }
 0x1a8   :  { %v867_v41 = vrot.slane %v866_v23, 2  ;;  %v880_v42 = vadd.f32 %v879_v40, %v878_v39 }
 0x1aa   :  { %v868_v43 = vadd.f32 %v867_v41, %v866_v23  ;;  %v881_v44 = vrot.slane %v880_v42, 2 }
 0x1ac   :  { %v869_v45 = vrot.slane %v868_v43, 1  ;;  %v882_v46 = vadd.f32 %v881_v44, %v880_v42 }
 0x1ae   :  { %v870_v47 = vadd.f32 %v869_v45, %v868_v43  ;;  %v883_v50 = vrot.slane %v882_v46, 1 }
 0x1b0   :  { %v871_v51 = vmul.f32 0.03125, %v870_v47  ;;  %v884_v34 = vadd.f32 %v883_v50, %v882_v46 }
 0x1b2   :  { %v885_v53 = vmul.f32 0.03125, %v884_v34  ;;  %v886_v54 = vmul.f32 %v871_v51, %v871_v51  ;;  %v889_v1 = vsub.f32 %v853_v61, %v871_v51  ;;  %v890_v3 = vsub.f32 %v855_v19, %v871_v51 }
 0x1b3   :  { %v891_v2 = vsub.f32 %v858_v20, %v871_v51  ;;  %v892_v5 = vsub.f32 %v860_v32, %v871_v51  ;;  %v498_v19 = vadd.f32 %v1320_v7, %v1830_v4  ;;  %v499_v61 = vadd.f32 %v1320_v7, %v1832_v8 }
 0x1b4   :  { %v887_v55 = vsub.f32 %v885_v53, %v886_v54 }
 0x1b6   :  { %v888_v56 = vmax.f32 %v887_v55, 0.0 }
 0x1b8   :  { %v893_v35 = vadd.f32 1e-05, %v888_v56 }
 0x1ba   :  { %1325 = vrsqrt.f32 %v893_v35  ;;  %vm900_vm11 = vweird.f32 %v893_v35 }
 0x1c0   :  { %v1326_v59 = vpop.eup %1325 }
 0x1c1   :  { %v895_v49 = vmul.f32 %v1326_v59, %v893_v35  ;;  %vm901_vm10 = vweird.f32 %v1326_v59 }
 0x1c2   :  { %vm902_vm12 = vmor %vm900_vm11, %vm901_vm10 }
 0x1c3   :  { %v896_v52 = vmul.f32 %v1326_v59, %v895_v49 }
 0x1c5   :  { %v897_v60 = vmul.f32 0.5, %v896_v52 }
 0x1c7   :  { %v898_v0 = vsub.f32 1.5, %v897_v60 }
 0x1c9   :  { %v899_v48 = vmul.f32 %v1326_v59, %v898_v0 }
 0x1cb   :  { %v903_v9 = vsel %vm902_vm12, %v1326_v59, %v899_v48 }
 0x1cc   :  { %v904_v10 = vmul.f32 %v903_v9, %v889_v1  ;;  %v905_v11 = vmul.f32 %v903_v9, %v890_v3  ;;  %v906_v12 = vmul.f32 %v903_v9, %v891_v2  ;;  %v907_v62 = vmul.f32 %v903_v9, %v892_v5 }
 0x1ce   :  { %v912_v13 = vmul.f32 %v1321_v6, %v904_v10  ;;  %v913_v15 = vmul.f32 %v1321_v6, %v905_v11  ;;  %v914_v16 = vmul.f32 %v1321_v6, %v906_v12  ;;  %v915_v17 = vmul.f32 %v1321_v6, %v907_v62 }
 0x1d0   :  { %v920_v20 = vadd.f32 %v1322_v14, %v912_v13  ;;  %v921_v58 = vadd.f32 %v1322_v14, %v913_v15  ;;  %v922_v24 = vadd.f32 %v1322_v14, %v914_v16  ;;  %v923_v25 = vadd.f32 %v1322_v14, %v915_v17 }
 0x1d2   :  { %v924_v26 = vadd.f32 %v920_v20, %v496_v21  ;;  %v925_v27 = vadd.f32 %v921_v58, %v497_v18  ;;  %v926_v22 = vadd.f32 %v922_v24, %v498_v19  ;;  %v927_v28 = vadd.f32 %v923_v25, %v499_v61 }
 0x1d4   :  { %v928_v29 = vmax.f32 %v924_v26, 0.0  ;;  %v929_v30 = vmax.f32 %v925_v27, 0.0  ;;  %v930_v31 = vmax.f32 %v926_v22, 0.0  ;;  %v931_v32 = vmax.f32 %v927_v28, 0.0 }
 0x1d6   :  { %932 = vst [vmem:[%s1867_s8] sm:$0xff] %v928_v29 }
 0x1d7   :  { %933 = vst [vmem:[%s1867_s8 + $0x8] sm:$0xff] %v929_v30 }
 0x1d8   :  { %934 = vst [vmem:[%s1867_s8 + $0x10] sm:$0xff] %v930_v31 }
 0x1d9   :  { %935 = vst [vmem:[%s1867_s8 + $0x18] sm:$0xff] %v931_v32 }

</bundles_post_ra>
